<compile_context>
chip_gen: v7x
topology: tpu7x:2x2x1
jax: 0.10.0
libtpu: 0.0.40
codegen_flags: <defaults>
</compile_context>

<pallas_src>
import jax
import jax.numpy as jnp
from jax.experimental import pallas as pl
from jax.experimental.pallas import tpu as pltpu


def _round_up(x: int, m: int) -> int:
    return (x + m - 1) // m * m


def _gt_to_action_kernel(tok_ref, table_ref, out_ref):
    """One row tile per grid step.

    tok_ref:   (TM, 1)  int32   ground-truth token ids (flattened rows)
    table_ref: (V, D)   float32 action-encoding lookup table (VMEM resident)
    out_ref:   (TM, D)  float32 action-sequence encoding
    """
    V = table_ref.shape[0]
    TM = out_ref.shape[0]

    ids = tok_ref[...]                         # (TM, 1) int32, ids on sublanes
    ids = jnp.clip(ids, 0, V - 1)              # match jnp.take clamping on TPU

    # One-hot(ids) @ table == row gather of action encodings, done on the MXU.
    vocab_iota = jax.lax.broadcasted_iota(jnp.int32, (TM, V), 1)   # (TM, V)
    one_hot = (ids == vocab_iota).astype(table_ref.dtype)          # (TM, V)

    enc = jnp.dot(one_hot, table_ref[...],
                  preferred_element_type=jnp.float32)              # (TM, D)
    out_ref[...] = enc.astype(out_ref.dtype)


def ground_truth_to_action_sequence(token_ids: jax.Array,
                                    action_table: jax.Array,
                                    *,
                                    tm: int = 512) -> jax.Array:
    """token_ids: (B, S) int32; action_table: (V, D) f32 -> (B, S, D) f32."""
    B, S = token_ids.shape
    V, D = action_table.shape
    N = B * S

    # Row-tile size: big lane/sublane-dense tiles for large N, otherwise the
    # whole (8-aligned) problem in a single grid step.
    TM = tm if N >= tm else _round_up(max(N, 1), 8)
    N_pad = _round_up(N, TM)

    # Flatten + pad token ids; padded rows index table row 0 and are sliced
    # off after the call, so no in-kernel tail masking is needed.
    tok_flat = token_ids.reshape(N).astype(jnp.int32)
    tok_flat = jnp.pad(tok_flat, (0, N_pad - N))
    tok_flat = tok_flat.reshape(N_pad, 1)

    out_flat = pl.pallas_call(
        _gt_to_action_kernel,
        out_shape=jax.ShapeDtypeStruct((N_pad, D), jnp.float32),
        grid_spec=pltpu.PrefetchScalarGridSpec(
            num_scalar_prefetch=0,
            grid=(N_pad // TM,),
            in_specs=[
                # token ids for this row tile
                pl.BlockSpec((TM, 1), lambda i: (i, 0)),
                # shared lookup table, block index constant -> stays resident
                pl.BlockSpec((V, D), lambda i: (0, 0)),
            ],
            # Lane-dense 2-D output tile: wide unmasked stores over D (128-mult).
            out_specs=pl.BlockSpec((TM, D), lambda i: (i, 0)),
        ),
        compiler_params=pltpu.CompilerParams(
            # parallel row-tile axis: megacore sharding on v7x, no-op on v5e/v6e
            dimension_semantics=("parallel",)),
    )(tok_flat, action_table)

    return out_flat[:N].reshape(B, S, D)


def _reference(token_ids, action_table):
    return jnp.take(action_table, token_ids, axis=0)


if __name__ == "__main__":
    key = jax.random.PRNGKey(0)
    k_tok, k_tab = jax.random.split(key)

    B, S = 2, 8          # batch of ground-truth programs, sequence length
    V, D = 32, 128       # token vocabulary, action-encoding dim

    token_ids = jax.random.randint(k_tok, (B, S), 0, V, dtype=jnp.int32)
    action_table = jax.random.normal(k_tab, (V, D), dtype=jnp.float32)

    out = ground_truth_to_action_sequence(token_ids, action_table)
    out = jax.block_until_ready(out)

    ref = _reference(token_ids, action_table)
    assert out.shape == (B, S, D)
    assert jnp.allclose(out, ref, atol=1e-6), "mismatch vs reference gather"

    print("KERNEL_OK")
</pallas_src>

<mosaic_0001>
module attributes {stable_mosaic.version = 11 : i64} {
  func.func @_gt_to_action_kernel(%arg0: i32, %arg1: memref<16x1xi32, #tpu.memory_space<vmem>>, %arg2: memref<32x128xf32, #tpu.memory_space<vmem>>, %arg3: memref<16x128xf32, #tpu.memory_space<vmem>>) attributes {dimension_semantics = [#tpu.dimension_semantics<parallel>], iteration_bounds = array<i64: 1>, scalar_prefetch = 0 : i64, scratch_operands = 0 : i64, tpu.core_type = #tpu.core_type<tc>, window_params = [{transform_indices = @transform_0, window_bounds = array<i64: 16, 1>}, {pipeline_mode = #tpu.pipeline_mode<synchronous>, transform_indices = @transform_1, window_bounds = array<i64: 32, 128>}, {transform_indices = @transform_2, window_bounds = array<i64: 16, 128>}]} {
    %c0 = arith.constant 0 : index
    %c0_0 = arith.constant 0 : index
    %0 = vector.load %arg1[%c0, %c0_0] : memref<16x1xi32, #tpu.memory_space<vmem>>, vector<16x1xi32>
    %c0_i32 = arith.constant 0 : i32
    %c31_i32 = arith.constant 31 : i32
    %1 = vector.broadcast %c0_i32 : i32 to vector<16x1xi32>
    %2 = arith.maxsi %1, %0 : vector<16x1xi32>
    %3 = vector.broadcast %c31_i32 : i32 to vector<16x1xi32>
    %4 = arith.minsi %3, %2 : vector<16x1xi32>
    %5 = tpu.iota {dimensions = array<i32: 1>} : vector<16x32xi32>
    %6 = vector.broadcast %4 : vector<16x1xi32> to vector<16x32xi32>
    %7 = arith.cmpi eq, %6, %5 : vector<16x32xi32>
    %8 = arith.extui %7 : vector<16x32xi1> to vector<16x32xi32>
    %9 = arith.sitofp %8 : vector<16x32xi32> to vector<16x32xf32>
    %c0_1 = arith.constant 0 : index
    %c0_2 = arith.constant 0 : index
    %10 = vector.load %arg2[%c0_1, %c0_2] : memref<32x128xf32, #tpu.memory_space<vmem>>, vector<32x128xf32>
    %cst = arith.constant dense<0.000000e+00> : vector<16x128xf32>
    %11 = tpu.matmul %9, %10, %cst {dimension_numbers = #tpu.dot_dimension_numbers<[1], [0], [0], [1], [0, 0, 1, 1], [], []>} : vector<16x32xf32>, vector<32x128xf32>, vector<16x128xf32> -> vector<16x128xf32>
    %c0_3 = arith.constant 0 : index
    %c0_4 = arith.constant 0 : index
    %12 = vector.load %arg3[%c0_3, %c0_4] : memref<16x128xf32, #tpu.memory_space<vmem>>, vector<16x128xf32>
    tpu.vector_store %arg3[%c0_3, %c0_4], %11 {strides = array<i32>} : memref<16x128xf32, #tpu.memory_space<vmem>>, vector<16x128xf32>,
    return
  }
  func.func @transform_0(%arg0: i32) -> (i32, i32) {
    %c0_i32 = arith.constant 0 : i32
    %c0_i32_0 = arith.constant 0 : i32
    return %arg0, %c0_i32 : i32, i32
  }
  func.func @transform_1(%arg0: i32) -> (i32, i32) {
    %c0_i32 = arith.constant 0 : i32
    %c0_i32_0 = arith.constant 0 : i32
    %c0_i32_1 = arith.constant 0 : i32
    return %c0_i32, %c0_i32_0 : i32, i32
  }
  func.func @transform_2(%arg0: i32) -> (i32, i32) {
    %c0_i32 = arith.constant 0 : i32
    %c0_i32_0 = arith.constant 0 : i32
    return %arg0, %c0_i32 : i32, i32
  }
}

</mosaic_0001>

<bundles_post_ra>
// kernel: tpu_custom_call.1
= control target key start
LH: loop header
LB: loop body
LE: loop exit
PB: predicated region body
PF: predicated region fallthrough
CT: control target
= control target key end

     0   :  { %7 = vsyncpa [#allocation3], 0  ;;  %s296_s0 = inlined_call_operand.vmem [shape: s32[16,1], index: 0, kind: input, shape index: {}]   ;;  %s297_s1 = inlined_call_operand.hbm [shape: f32[32,128], index: 1, kind: input, shape index: {}]   ;;  %s298_s2 = inlined_call_operand.hbm [shape: f32[16,128], index: 2, kind: output, shape index: {}]  }
   0x1   :  { %8 = vsyncpa [#allocation4], 0  ;;  %s239_s9 = smov [#allocation2]   ;;  %s191_s13 = scalar_lea.hbm %s297_s1, 512 }
   0x2   :  { %s16_s10 = sshll.u32 %s239_s9, 4  ;;  %p192_p0 = scmp.ne.s32.totalorder %s297_s1, %s191_s13  ;;  %s17_s10 = int_to_ptr.vmem [resolvable:$true] %s16_s10 }
   0x3   :  { %p195_p1 = scmp.lt.u32.totalorder %s191_s13, %s297_s1 }
   0x5   :  { %p197_p2 = pnand %p195_p1, %p192_p0 }
   0x7   :  { %200 = shalt.err (!%p197_p2)
}
   0x8   :  { %s201_s18 = scalar_lea.vmem %s17_s10, 512  ;;  %p206_p4 = scmp.lt.s32.totalorder %s17_s10, %s17_s10 }
   0x9   :  { %p202_p3 = scmp.ne.s32.totalorder %s17_s10, %s201_s18  ;;  %p207_p5 = scmp.lt.s32.totalorder %s201_s18, %s201_s18 }
   0xb   :  { %p208_p6 = por %p207_p5, %p206_p4 }
   0xd   :  { %p209_p7 = pnand %p208_p6, %p202_p3 }
   0xf   :  { %212 = shalt.err (!%p209_p7)
}
  0x10   :  { %s240_s19 = smov 128   ;;  %s241_s20 = smov 8  }
  0x11   :  { %22 = dma.hbm_to_vmem [thread:$0]  %s297_s1, 512, %s17_s10, [#allocation3], %s240_s19, %s240_s19, %s241_s20  }
  0x12   :  { %235 = dma.done.wait [#allocation3], 512  }
  0x13   :  { %236 = vsyncadd [#allocation3], 4294966784  ;;  %v242_v0 = vmov 0   ;;  %v26_v1 = vld [vmem:[%s296_s0] sm:$0xff]  ;;  %v27_v2 = vld [vmem:[%s296_s0 + $0x8] sm:$0xff]  ;;  %v36_v13 = vlaneseq  ;;  %vm54_vm4 = vcmask 261120  }
  0x14   :  { %190 = vset.pattern.permute.xlu0 %v242_v0  ;;  %v50_v3 = vld [vmem:[#allocation2] sm:$0xff]  ;;  %vm28_vm0 = vcmp.gt.s32.totalorder %v26_v1, 0  ;;  %vm30_vm1 = vcmp.gt.s32.totalorder %v27_v2, 0  ;;  %v51_v4 = vld [vmem:[#allocation2 + $0x8] sm:$0xff]  ;;  %v52_v9 = vld [vmem:[#allocation2 + $0x10] sm:$0xff]  ;;  %v243_v16 = vmov 0.0  }
  0x15   :  { %v29_v5 = vsel %vm28_vm0, %v26_v1, 0  ;;  %v31_v6 = vsel %vm30_vm1, %v27_v2, 0  ;;  %v176_v7 = vpack.c.bf16 %v51_v4, %v50_v3  ;;  %v53_v10 = vld [vmem:[#allocation2 + $0x18] sm:$0xff]  ;;  %v37_v14 = vand.u32 127, %v36_v13  ;;  %s244_s0 = smov [#allocation5]  }
  0x16   :  { %vm32_vm2 = vcmp.lt.s32.totalorder %v29_v5, 31  ;;  %vm34_vm3 = vcmp.lt.s32.totalorder %v31_v6, 31  ;;  %v180_v11 = vpack.c.bf16 %v53_v10, %v52_v9  ;;  %s143_s1 = sshll.u32 %s244_s0, 4  ;;  %s144_s1 = int_to_ptr.vmem [resolvable:$true] %s143_s1 }
  0x17   :  { %v33_v8 = vsel %vm32_vm2, %v29_v5, 31  ;;  %177 = vmatprep.subr.bf16.mxu0 %v176_v7  ;;  %v35_v12 = vsel %vm34_vm3, %v31_v6, 31  ;;  %s213_s27 = scalar_lea.vmem %s144_s1, 256  ;;  %p218_p9 = scmp.lt.s32.totalorder %s144_s1, %s144_s1 }
  0x18   :  { %39 = vperm.xlu0 %190, %v33_v8   ;;  %179 = vmatpush3.bf16.msra.mxu0 %v176_v7  ;;  %p214_p8 = scmp.ne.s32.totalorder %s144_s1, %s213_s27  ;;  %p219_p10 = scmp.lt.s32.totalorder %s213_s27, %s213_s27 }
  0x19   :  { %181 = vmatprep.subr.bf16.mxu0 %v180_v11 }
  0x1a   :  { %p220_p11 = por %p219_p10, %p218_p9 }
  0x1c   :  { %42 = vperm.xlu0 %190, %v35_v12   ;;  %183 = vmatpush3.bf16.msra.mxu0 %v180_v11  ;;  %p221_p12 = pnand %p220_p11, %p214_p8 }
  0x97   :  { %v40_v15 = vpop.permute.xlu0 %39 }
  0x98   :  { %vm44_vm5 = vcmp.eq.s32.totalorder %v40_v15, %v37_v14 }
  0x99   :  { %v155_v17 = vsel %vm44_vm5, 1.0, %v243_v16 }
  0x9a   :  { %173 = vmatprep.mubr.msk.f32.mxu0 %vm54_vm4, %v155_v17 }
  0x9b   :  { %v43_v18 = vpop.permute.xlu0 %42 }
  0x9c   :  { %vm45_vm6 = vcmp.eq.s32.totalorder %v43_v18, %v37_v14 }
  0x9d   :  { %v156_v19 = vsel %vm45_vm6, 1.0, %v243_v16 }
  0x9e   :  { %174 = vmatmul.mubr.msk.f32.vlgmr.msra.gmra.mrb[0].mxu0 %vm54_vm4, %v156_v19 }
 0x171   :  { %v175_v20 = vpop.f32.mrb[0].mxu0 }
 0x172   :  { %137 = vst [vmem:[#allocation5 + $0x8] sm:$0xff] %v175_v20  ;;  %v127_v21 = vpop.f32.mrb[1].mxu0 }
 0x173   :  { %136 = vst [vmem:[#allocation5] sm:$0xff] %v127_v21 }
 0x174   :  { %224 = shalt.err (!%p221_p12)
}
 0x175   :  { %s225_s30 = scalar_lea.hbm %s298_s2, 256 }
 0x176   :  { %p226_p13 = scmp.ne.s32.totalorder %s298_s2, %s225_s30  ;;  %p229_p0 = scmp.lt.u32.totalorder %s225_s30, %s298_s2 }
 0x178   :  { %p231_p1 = pnand %p229_p0, %p226_p13 }
 0x17a   :  { %234 = shalt.err (!%p231_p1)
}
 0x17b   :  { %149 = dma.vmem_to_hbm [thread:$0]  %s144_s1, 256, %s298_s2, [#allocation4], %s240_s19, %s240_s19, %s241_s20  }
 0x17c   :  { %237 = dma.done.wait [#allocation4], 256  }
 0x17d   :  { %238 = vsyncadd [#allocation4], 4294967040 }
 0x17e   :  { %153 = vsyncpa [#allocation3], 1 }
 0x17f   :  { %154 = vsyncpa [#allocation4], 1 }

</bundles_post_ra>
